<compile_context>
chip_gen: v6e
topology: v6e:2x2x1
jax: 0.10.0
libtpu: 0.0.40
codegen_flags: <defaults>
</compile_context>

<pallas_src>
import functools

import jax
import jax.numpy as jnp
from jax import lax
from jax.experimental import pallas as pl
from jax.experimental.pallas import tpu as pltpu


_N_F32_TEMPS = 7  # conservative count of live f32 [tile_n, c_chunk] temporaries


def _round_down(x, m):
    return (x // m) * m


def kd_loss_kernel(student_ref, teacher_ref, out_ref, *,
                   inv_temperature, tile_n, total_n, c, c_chunk, mask_rows):
    """Per-tile partial sum of sum_c p_t * (log p_t - log p_s).

    Uses sum_c p_t == 1 to avoid materializing either log-prob tile, and never
    materializes p_t either: the teacher-softmax normalization is applied to
    the reduced per-row numerator (one scalar multiply per row).
    """
    inv_t = jnp.float32(inv_temperature)

    if c_chunk >= c:
        # ---- Full-C path: one pass over the [tile_n, C] block. ----
        s = student_ref[...].astype(jnp.float32) * inv_t
        t = teacher_ref[...].astype(jnp.float32) * inv_t

        t_max = jnp.max(t, axis=1, keepdims=True)
        t_shift = t - t_max
        t_exp = jnp.exp(t_shift)
        t_sum = jnp.sum(t_exp, axis=1, keepdims=True)            # [tile_n, 1]

        s_max = jnp.max(s, axis=1, keepdims=True)
        s_shift = s - s_max
        s_sum = jnp.sum(jnp.exp(s_shift), axis=1, keepdims=True)  # [tile_n, 1]

        #   sum_c p_t*(log_p_t - log_p_s)
        # = (sum_c e_t*(t_shift - s_shift)) / t_sum + log(s_sum) - log(t_sum)
        kd_num = jnp.sum(t_exp * (t_shift - s_shift), axis=1, keepdims=True)
        kd_row = (kd_num * pl.reciprocal(t_sum, approx=False)
                  + jnp.log(s_sum) - jnp.log(t_sum))              # [tile_n, 1]
    else:
        # ---- Chunked class axis (vocab-scale C): online max/sum so the f32
        # temporaries stay at [tile_n, c_chunk] while the input block keeps
        # full C (full-size DMAs, large row tiles). ----
        def update(state, t_c, s_c):
            m_t, sum_t, num, m_s, sum_s = state
            t_c = t_c.astype(jnp.float32) * inv_t
            s_c = s_c.astype(jnp.float32) * inv_t

            m_t_new = jnp.maximum(m_t, jnp.max(t_c, axis=1, keepdims=True))
            a_t = jnp.exp(m_t - m_t_new)
            e_t = jnp.exp(t_c - m_t_new)
            sum_t = a_t * sum_t + jnp.sum(e_t, axis=1, keepdims=True)
            num = a_t * num + jnp.sum(e_t * (t_c - s_c), axis=1, keepdims=True)

            m_s_new = jnp.maximum(m_s, jnp.max(s_c, axis=1, keepdims=True))
            a_s = jnp.exp(m_s - m_s_new)
            sum_s = (a_s * sum_s
                     + jnp.sum(jnp.exp(s_c - m_s_new), axis=1, keepdims=True))
            return (m_t_new, sum_t, num, m_s_new, sum_s)

        minus_inf = jnp.full((tile_n, 1), -jnp.inf, jnp.float32)
        zeros = jnp.zeros((tile_n, 1), jnp.float32)
        state = (minus_inf, zeros, zeros, minus_inf, zeros)

        num_full = c // c_chunk
        rem = c - num_full * c_chunk

        def body(k, st):
            off = pl.multiple_of(k * c_chunk, 128)   # c_chunk is a 128-multiple
            return update(st,
                          teacher_ref[:, pl.ds(off, c_chunk)],
                          student_ref[:, pl.ds(off, c_chunk)])

        state = lax.fori_loop(0, num_full, body, state)
        if rem:
            off = num_full * c_chunk
            state = update(state,
                           teacher_ref[:, pl.ds(off, rem)],
                           student_ref[:, pl.ds(off, rem)])

        m_t, sum_t, num, m_s, sum_s = state
        #   sum_c p_t*(log_p_t - log_p_s)
        # = num / sum_t + (m_s - m_t) + log(sum_s) - log(sum_t)
        kd_row = (num * pl.reciprocal(sum_t, approx=False)
                  + (m_s - m_t) + jnp.log(sum_s) - jnp.log(sum_t))

    if mask_rows:
        # Last tile may be grid-padded; correctness relies on this mask (padded
        # rows read undefined data, but jnp.where does not propagate NaN/Inf
        # from the untaken branch).
        i = pl.program_id(0)
        row_ids = jax.lax.broadcasted_iota(jnp.int32, kd_row.shape, 0) + i * tile_n
        kd_row = jnp.where(row_ids < total_n, kd_row, 0.0)

    kd_tile = jnp.sum(kd_row)                                     # scalar partial
    # Lane-dense (1, 8, 128) store of the per-tile partial; wrapper reads [0, 0].
    out_ref[...] = jnp.broadcast_to(kd_tile, out_ref.shape).astype(jnp.float32)


def _pick_tiles(n, c, s_item, t_item, vmem_cap_bytes,
                c_chunk_override=None, tile_n_override=None):
    """Choose (tile_n, c_chunk, vmem_limit_bytes), generation-aware."""
    # Strictest sublane requirement across BOTH input dtypes (keyed off the
    # SMALLEST itemsize: f32 -> 8, bf16 -> 16, int8/fp8 -> 32). Keying off the
    # larger itemsize could emit e.g. an (8, C) block for a bf16 input, which
    # violates its (16, 128) minimum tile.
    min_item = min(s_item, t_item)
    sublane = {4: 8, 2: 16, 1: 32}.get(min_item, 8)

    # Scoped-VMEM limit to request: v5e/v6e have 128 MiB physical VMEM -> 96 MiB
    # is safe; v7x has 64 MiB -> stay <= 56 MiB.
    vmem_limit = int(min(96 * 1024 * 1024, (vmem_cap_bytes * 7) // 8))
    usable = int(vmem_limit * 0.85)   # headroom for output blocks / internals

    # Per-grid-step HBM->VMEM DMA target (both inputs, one pipeline buffer).
    # Bigger tiles amortize the ~0.35us fixed per-step overhead; v7x's higher
    # per-TC HBM BW makes that overhead a larger fraction so it also wants big
    # tiles, but its smaller VMEM caps them lower.
    big_vmem = vmem_cap_bytes >= 100 * 1024 * 1024
    dma_target = (12 if big_vmem else 7) * 1024 * 1024

    in_row = c * (s_item + t_item)               # input bytes per batch row
    rows_target = max(sublane, _round_down(dma_target // in_row, sublane))

    def rows_fit(cc):
        # Rows that fit: double-buffered inputs (full C per block) + live f32
        # temporaries at the chunk width (counts the f32 upcast of bf16/int8).
        row_cost = 2 * in_row + _N_F32_TEMPS * 4 * cc
        return _round_down(usable // row_cost, sublane)   # may be 0

    # Class-axis chunk: for vocab-scale C the full-C f32 temporaries would
    # squeeze the row tile (and each DMA) below target, so cap the temporaries
    # at c_chunk and reduce online inside the kernel.
    if c_chunk_override is not None and c_chunk_override < c:
        c_chunk = max(128, _round_down(min(c_chunk_override, c), 128))
    else:
        c_chunk = c
        if c >= 512 and rows_fit(c) < rows_target:
            c_chunk = 2048
            while c_chunk > 256 and rows_fit(c_chunk) < rows_target:
                c_chunk //= 2
            if c_chunk >= c:
                c_chunk = c

    cand = min(rows_target, max(rows_fit(c_chunk), 0))
    if cand < sublane:
        # TODO(synk): for extreme C where the inputs alone exceed VMEM, also
        # tile the class axis at the BlockSpec/DMA level (not just the temps).
        cand = sublane

    if tile_n_override is not None:
        tile_n = int(tile_n_override)
    elif cand >= n:
        tile_n = n            # one block spanning the whole batch is allowed
    else:
        tile_n = max(sublane, _round_down(cand, sublane))

    return tile_n, c_chunk, vmem_limit


def kd_loss(student_outputs, teacher_outputs, labels=None, temperature=3.0, *,
            c_chunk=None, tile_n=None):
    # `labels` accepted to mirror the PyTorch forward signature; the CE term
    # they feed is computed but never returned by the module (dead code), so
    # only the KD term is produced here.
    del labels
    n, c = student_outputs.shape
    s_item = jnp.dtype(student_outputs.dtype).itemsize
    t_item = jnp.dtype(teacher_outputs.dtype).itemsize

    try:
        vmem_cap = int(pltpu.get_tpu_info().vmem_capacity_bytes)
    except Exception:  # conservative fallback (v7x-sized VMEM)
        vmem_cap = 64 * 1024 * 1024

    tile_n, c_chunk, vmem_limit = _pick_tiles(
        n, c, s_item, t_item, vmem_cap,
        c_chunk_override=c_chunk, tile_n_override=tile_n)
    num_tiles = pl.cdiv(n, tile_n)
    mask_rows = (n % tile_n) != 0

    kernel = functools.partial(
        kd_loss_kernel,
        inv_temperature=1.0 / float(temperature),
        tile_n=tile_n, total_n=n, c=c, c_chunk=c_chunk, mask_rows=mask_rows)

    bytes_in = n * c * (s_item + t_item)
    cost = pl.CostEstimate(
        flops=8 * n * c,
        transcendentals=2 * n * c + 6 * n,
        bytes_accessed=bytes_in + num_tiles * 8 * 128 * 4)

    # NOTE(v7x): with bf16 inputs at ~3.2 TB/s per TC the two full-tile f32
    # exp() calls can flip this kernel from HBM-bound to EUP-bound; if a bundle
    # dump confirms that, tune the exp path rather than tile sizes.
    out = pl.pallas_call(
        kernel,
        out_shape=jax.ShapeDtypeStruct((num_tiles, 8, 128), jnp.float32),
        grid=(num_tiles,),
        in_specs=[
            pl.BlockSpec((tile_n, c), lambda i: (i, 0)),
            pl.BlockSpec((tile_n, c), lambda i: (i, 0)),
        ],
        out_specs=pl.BlockSpec((1, 8, 128), lambda i: (i, 0, 0)),
        compiler_params=pltpu.CompilerParams(
            dimension_semantics=("parallel",),
            vmem_limit_bytes=vmem_limit,
        ),
        cost_estimate=cost,
    )(student_outputs, teacher_outputs)

    temp = jnp.float32(temperature)
    return jnp.sum(out[:, 0, 0]) / jnp.float32(n) * (temp * temp)


def kd_loss_ref(student_outputs, teacher_outputs, temperature=3.0):
    temp = float(temperature)
    p_t = jax.nn.softmax(teacher_outputs.astype(jnp.float32) / temp, axis=1)
    log_ps = jax.nn.log_softmax(student_outputs.astype(jnp.float32) / temp, axis=1)
    log_pt = jax.nn.log_softmax(teacher_outputs.astype(jnp.float32) / temp, axis=1)
    n = student_outputs.shape[0]
    return jnp.sum(p_t * (log_pt - log_ps)) / n * (temp ** 2)


if __name__ == "__main__":
    key = jax.random.PRNGKey(0)
    k1, k2, k3 = jax.random.split(key, 3)

    # Test 1: small logits (batch=8, classes=32) -> full-C path, single tile.
    N, C = 8, 32
    student = jax.random.normal(k1, (N, C), dtype=jnp.float32)
    teacher = jax.random.normal(k2, (N, C), dtype=jnp.float32)
    labels = jax.random.randint(k3, (N,), 0, C, dtype=jnp.int32)

    out = jax.block_until_ready(kd_loss(student, teacher, labels, temperature=3.0))
    ref = jax.block_until_ready(kd_loss_ref(student, teacher, temperature=3.0))
    assert jnp.allclose(out, ref, rtol=1e-5, atol=1e-5), (out, ref)

    # Test 2: exercise the chunked class-axis (online-softmax) path, a grid-
    # padded last row tile (row mask), and the multi-tile partial-sum
    # reduction, still at small shapes by forcing tile_n / c_chunk overrides.
    k4, k5 = jax.random.split(jax.random.PRNGKey(1))
    N2, C2 = 20, 640
    student2 = jax.random.normal(k4, (N2, C2), dtype=jnp.float32)
    teacher2 = jax.random.normal(k5, (N2, C2), dtype=jnp.float32)
    out2 = jax.block_until_ready(
        kd_loss(student2, teacher2, None, temperature=3.0, c_chunk=256, tile_n=8))
    ref2 = jax.block_until_ready(kd_loss_ref(student2, teacher2, temperature=3.0))
    assert jnp.allclose(out2, ref2, rtol=1e-5, atol=1e-5), (out2, ref2)

    print("KERNEL_OK")
</pallas_src>

<mosaic_0001>
module attributes {stable_mosaic.version = 11 : i64} {
  func.func @kd_loss_kernel(%arg0: i32, %arg1: memref<8x32xf32, #tpu.memory_space<vmem>>, %arg2: memref<8x32xf32, #tpu.memory_space<vmem>>, %arg3: memref<1x8x128xf32, #tpu.memory_space<vmem>>) attributes {dimension_semantics = [#tpu.dimension_semantics<parallel>], iteration_bounds = array<i64: 1>, scalar_prefetch = 0 : i64, scratch_operands = 0 : i64, tpu.core_type = #tpu.core_type<tc>, window_params = [{transform_indices = @transform_0, window_bounds = array<i64: 8, 32>}, {transform_indices = @transform_1, window_bounds = array<i64: 8, 32>}, {transform_indices = @transform_2, window_bounds = array<i64: 1, 8, 128>}]} {
    %c0 = arith.constant 0 : index
    %c0_0 = arith.constant 0 : index
    %0 = vector.load %arg1[%c0, %c0_0] : memref<8x32xf32, #tpu.memory_space<vmem>>, vector<8x32xf32>
    %cst = arith.constant 0.333333343 : f32
    %1 = vector.broadcast %cst : f32 to vector<8x32xf32>
    %2 = arith.mulf %0, %1 : vector<8x32xf32>
    %c0_1 = arith.constant 0 : index
    %c0_2 = arith.constant 0 : index
    %3 = vector.load %arg2[%c0_1, %c0_2] : memref<8x32xf32, #tpu.memory_space<vmem>>, vector<8x32xf32>
    %cst_3 = arith.constant 0.333333343 : f32
    %4 = vector.broadcast %cst_3 : f32 to vector<8x32xf32>
    %5 = arith.mulf %3, %4 : vector<8x32xf32>
    %cst_4 = arith.constant dense<0xFF800000> : vector<8xf32>
    %6 = vector.multi_reduction <maximumf>, %5, %cst_4 [1] : vector<8x32xf32> to vector<8xf32>
    %7 = vector.shape_cast %6 : vector<8xf32> to vector<8x1xf32>
    %8 = vector.broadcast %7 : vector<8x1xf32> to vector<8x32xf32>
    %9 = arith.subf %5, %8 : vector<8x32xf32>
    %10 = math.exp %9 : vector<8x32xf32>
    %cst_5 = arith.constant dense<0.000000e+00> : vector<8xf32>
    %11 = vector.multi_reduction <add>, %10, %cst_5 [1] : vector<8x32xf32> to vector<8xf32>
    %12 = vector.shape_cast %11 : vector<8xf32> to vector<8x1xf32>
    %cst_6 = arith.constant dense<0xFF800000> : vector<8xf32>
    %13 = vector.multi_reduction <maximumf>, %2, %cst_6 [1] : vector<8x32xf32> to vector<8xf32>
    %14 = vector.shape_cast %13 : vector<8xf32> to vector<8x1xf32>
    %15 = vector.broadcast %14 : vector<8x1xf32> to vector<8x32xf32>
    %16 = arith.subf %2, %15 : vector<8x32xf32>
    %17 = math.exp %16 : vector<8x32xf32>
    %cst_7 = arith.constant dense<0.000000e+00> : vector<8xf32>
    %18 = vector.multi_reduction <add>, %17, %cst_7 [1] : vector<8x32xf32> to vector<8xf32>
    %19 = vector.shape_cast %18 : vector<8xf32> to vector<8x1xf32>
    %20 = arith.subf %9, %16 : vector<8x32xf32>
    %21 = arith.mulf %10, %20 : vector<8x32xf32>
    %cst_8 = arith.constant dense<0.000000e+00> : vector<8xf32>
    %22 = vector.multi_reduction <add>, %21, %cst_8 [1] : vector<8x32xf32> to vector<8xf32>
    %23 = vector.shape_cast %22 : vector<8xf32> to vector<8x1xf32>
    %24 = tpu.reciprocal %12 : vector<8x1xf32> -> vector<8x1xf32>
    %25 = arith.mulf %23, %24 : vector<8x1xf32>
    %26 = math.log %19 : vector<8x1xf32>
    %27 = arith.addf %25, %26 : vector<8x1xf32>
    %28 = math.log %12 : vector<8x1xf32>
    %29 = arith.subf %27, %28 : vector<8x1xf32>
    %30 = vector.shape_cast %29 : vector<8x1xf32> to vector<1x8x1xf32>
    %cst_9 = arith.constant dense<0.000000e+00> : vector<1xf32>
    %31 = vector.multi_reduction <add>, %30, %cst_9 [1, 2] : vector<1x8x1xf32> to vector<1xf32>
    %32 = vector.shape_cast %31 : vector<1xf32> to vector<1x1x1xf32>
    %33 = vector.extract %32[0, 0, 0] : f32 from vector<1x1x1xf32>
    %34 = vector.broadcast %33 : f32 to vector<1x8x128xf32>
    %c0_10 = arith.constant 0 : index
    %c0_11 = arith.constant 0 : index
    %c0_12 = arith.constant 0 : index
    %35 = vector.load %arg3[%c0_10, %c0_11, %c0_12] : memref<1x8x128xf32, #tpu.memory_space<vmem>>, vector<1x8x128xf32>
    tpu.vector_store %arg3[%c0_10, %c0_11, %c0_12], %34 {strides = array<i32>} : memref<1x8x128xf32, #tpu.memory_space<vmem>>, vector<1x8x128xf32>,
    return
  }
  func.func @transform_0(%arg0: i32) -> (i32, i32) {
    %c0_i32 = arith.constant 0 : i32
    %c0_i32_0 = arith.constant 0 : i32
    return %arg0, %c0_i32 : i32, i32
  }
  func.func @transform_1(%arg0: i32) -> (i32, i32) {
    %c0_i32 = arith.constant 0 : i32
    %c0_i32_0 = arith.constant 0 : i32
    return %arg0, %c0_i32 : i32, i32
  }
  func.func @transform_2(%arg0: i32) -> (i32, i32, i32) {
    %c0_i32 = arith.constant 0 : i32
    %c0_i32_0 = arith.constant 0 : i32
    %c0_i32_1 = arith.constant 0 : i32
    return %arg0, %c0_i32, %c0_i32_0 : i32, i32, i32
  }
}

</mosaic_0001>

<bundles_post_ra>
// kernel: tpu_custom_call.1
= control target key start
LH: loop header
LB: loop body
LE: loop exit
PB: predicated region body
PF: predicated region fallthrough
CT: control target
= control target key end

     0   :  { %7 = vsyncpa [#allocation3], 0  ;;  %s214_s0 = inlined_call_operand.hbm [shape: f32[8,32], index: 0, kind: input, shape index: {}]   ;;  %s215_s1 = inlined_call_operand.hbm [shape: f32[8,32], index: 1, kind: input, shape index: {}]   ;;  %s216_s2 = inlined_call_operand.hbm [shape: f32[1,8,128], index: 2, kind: output, shape index: {}]  }
   0x1   :  { %8 = vsyncpa [#allocation6], 0 }
   0x2   :  { %9 = vsyncpa [#allocation4], 0  ;;  %s182_s9 = smov [#allocation2]   ;;  %s183_s11 = smov [#allocation5]  }
   0x3   :  { %s16_s10 = sshll.u32 %s182_s9, 4  ;;  %s26_s12 = sshll.u32 %s183_s11, 4  ;;  %s17_s10 = int_to_ptr.vmem [resolvable:$true] %s16_s10  ;;  %s27_s12 = int_to_ptr.vmem [resolvable:$true] %s26_s12 }
   0x4   :  { %s124_s13 = scalar_lea.vmem %s17_s10, 128  ;;  %p129_p1 = scmp.lt.s32.totalorder %s17_s10, %s17_s10 }
   0x5   :  { %p125_p0 = scmp.ne.s32.totalorder %s17_s10, %s124_s13  ;;  %p130_p2 = scmp.lt.s32.totalorder %s124_s13, %s124_s13 }
   0x7   :  { %p131_p3 = por %p130_p2, %p129_p1 }
   0x9   :  { %p132_p4 = pnand %p131_p3, %p125_p0 }
   0xb   :  { %135 = shalt.err (!%p132_p4)
}
   0xc   :  { %19 = dma.hbm_to_vmem [thread:$0]  %s214_s0, 128, %s17_s10, [#allocation3]  }
   0xd   :  { %s144_s16 = scalar_lea.vmem %s27_s12, 128  ;;  %p149_p6 = scmp.lt.s32.totalorder %s27_s12, %s27_s12 }
   0xe   :  { %p145_p5 = scmp.ne.s32.totalorder %s27_s12, %s144_s16  ;;  %p150_p7 = scmp.lt.s32.totalorder %s144_s16, %s144_s16 }
  0x10   :  { %p151_p8 = por %p150_p7, %p149_p6 }
  0x12   :  { %p152_p9 = pnand %p151_p8, %p145_p5 }
  0x14   :  { %155 = shalt.err (!%p152_p9)
}
  0x15   :  { %29 = dma.hbm_to_vmem [thread:$0]  %s215_s1, 128, %s27_s12, [#allocation6]  }
  0x16   :  { %176 = dma.done.wait [#allocation3], 128  }
  0x17   :  { %177 = vsyncadd [#allocation3], 4294967168 }
  0x18   :  { %178 = dma.done.wait [#allocation6], 128  }
  0x19   :  { %179 = vsyncadd [#allocation6], 4294967168  ;;  %v38_v0 = vld [vmem:[#allocation5] sm:$0xff]  ;;  %vm40_vm0 = vcmask 261120   ;;  %v36_v1 = vld [vmem:[#allocation2] sm:$0xff]  ;;  %vm72_vm1 = vcmask 7168  }
  0x1a   :  { %v39_v2 = vmul.f32 0.33333334, %v38_v0  ;;  %v37_v3 = vmul.f32 0.33333334, %v36_v1  ;;  %s184_s0 = smov [#allocation7]  }
  0x1b   :  { %s91_s1 = sshll.u32 %s184_s0, 4  ;;  %s92_s1 = int_to_ptr.vmem [resolvable:$true] %s91_s1 }
  0x1c   :  { %v41_v4 = vsel %vm40_vm0, %v39_v2, -inf  ;;  %v50_v5 = vsel %vm40_vm0, %v37_v3, -inf  ;;  %s156_s20 = scalar_lea.vmem %s92_s1, 128  ;;  %p161_p11 = scmp.lt.s32.totalorder %s92_s1, %s92_s1 }
  0x1d   :  { %42 = vmax.xlane.f32.xlu0 %v41_v4  ;;  %p157_p10 = scmp.ne.s32.totalorder %s92_s1, %s156_s20  ;;  %p162_p12 = scmp.lt.s32.totalorder %s156_s20, %s156_s20 }
  0x1f   :  { %p163_p13 = por %p162_p12, %p161_p11 }
  0x21   :  { %51 = vmax.xlane.f32.xlu0 %v50_v5  ;;  %p164_p0 = pnand %p163_p13, %p157_p10 }
  0xa6   :  { %v43_v6 = vpop.xlane.xlu0 %42 }
  0xa7   :  { %v44_v7 = vsub.f32 %v39_v2, %v43_v6 }
  0xa9   :  { %v45_v8 = vmul.f32 1.442695, %v44_v7 }
  0xaa   :  { %v52_v9 = vpop.xlane.xlu0 %51 }
  0xab   :  { %106 = vpow2.f32 %v45_v8  ;;  %v53_v10 = vsub.f32 %v37_v3, %v52_v9 }
  0xad   :  { %v54_v11 = vmul.f32 1.442695, %v53_v10  ;;  %v59_v12 = vsub.f32 %v44_v7, %v53_v10 }
  0xaf   :  { %108 = vpow2.f32 %v54_v11 }
  0xb8   :  { %v107_v13 = vpop.eup %106 }
  0xb9   :  { %v47_v14 = vsel %vm40_vm0, %v107_v13, 0.0  ;;  %v60_v15 = vmul.f32 %v107_v13, %v59_v12 }
  0xba   :  { %48 = vadd.xlane.f32.xlu1 %v47_v14 }
  0xbb   :  { %v61_v16 = vsel %vm40_vm0, %v60_v15, 0.0 }
  0xbc   :  { %v109_v17 = vpop.eup %108  ;;  %62 = vadd.xlane.f32.xlu0 %v61_v16 }
  0xbd   :  { %v56_v18 = vsel %vm40_vm0, %v109_v17, 0.0 }
  0xbe   :  { %57 = vadd.xlane.f32.xlu1 %v56_v18 }
 0x143   :  { %v49_v19 = vpop.xlane.xlu1 %48 }
 0x144   :  { %110 = vrcp.f32 %v49_v19 }
 0x145   :  { %112 = vlog2.f32 %v49_v19  ;;  %v63_v24 = vpop.xlane.xlu0 %62 }
 0x147   :  { %v58_v20 = vpop.xlane.xlu1 %57 }
 0x148   :  { %114 = vlog2.f32 %v58_v20 }
 0x151   :  { %v111_v21 = vpop.eup %110 }
 0x152   :  { %v113_v22 = vpop.eup %112  ;;  %v65_v25 = vmul.f32 %v111_v21, %v63_v24 }
 0x153   :  { %v70_v28 = vmul.f32 0.6931472, %v113_v22 }
 0x155   :  { %v115_v23 = vpop.eup %114 }
 0x156   :  { %v67_v26 = vmul.f32 0.6931472, %v115_v23 }
 0x158   :  { %v68_v27 = vadd.f32 %v67_v26, %v65_v25 }
 0x15a   :  { %v71_v29 = vsub.f32 %v68_v27, %v70_v28 }
 0x15c   :  { %v73_v30 = vsel %vm72_vm1, %v71_v29, 0.0 }
 0x15d   :  { %74 = vadd.xlane.f32.xlu1 %v73_v30 }
 0x1e6   :  { %v75_v31 = vpop.xlane.xlu1 %74 }
 0x1e7   :  { %v76_v32 = vrot.slane %v75_v31, 4 }
 0x1e9   :  { %v77_v33 = vadd.f32 %v76_v32, %v75_v31 }
 0x1eb   :  { %v78_v34 = vrot.slane %v77_v33, 2 }
 0x1ed   :  { %v79_v35 = vadd.f32 %v78_v34, %v77_v33 }
 0x1ef   :  { %v80_v36 = vrot.slane %v79_v35, 1 }
 0x1f1   :  { %v81_v37 = vadd.f32 %v80_v36, %v79_v35 }
 0x1f3   :  { %101 = vpush %v81_v37 }
 0x224   :  { %s102_s19 = spop %101 }
 0x225   :  { %v83_v38 = vstv %s102_s19 }
 0x226   :  { %84 = vst [vmem:[#allocation7] sm:$0xff] %v83_v38 }
 0x227   :  { %167 = shalt.err (!%p164_p0)
}
 0x228   :  { %94 = dma.vmem_to_hbm [thread:$0]  %s92_s1, 128, %s216_s2, [#allocation4]  }
 0x229   :  { %180 = dma.done.wait [#allocation4], 128  }
 0x22a   :  { %181 = vsyncadd [#allocation4], 4294967168 }
 0x22b   :  { %98 = vsyncpa [#allocation3], 1 }
 0x22c   :  { %99 = vsyncpa [#allocation6], 1 }
 0x22d   :  { %100 = vsyncpa [#allocation4], 1 }

</bundles_post_ra>
